<compile_context>
chip_gen: v7x
topology: tpu7x:2x2x1
jax: 0.10.0
libtpu: 0.0.40
codegen_flags: <defaults>
</compile_context>

<pallas_src>
import functools

import jax
import jax.numpy as jnp
from jax.experimental import pallas as pl
from jax.experimental.pallas import tpu as pltpu


# ----------------------------- in-kernel helpers ----------------------------

def _gelu_tanh(x):
    # tanh-approximate GELU (VPU + EUP only; safe Mosaic lowering). fp32 math.
    c = 0.7978845608028654  # sqrt(2/pi)
    return 0.5 * x * (1.0 + jnp.tanh(c * (x + 0.044715 * x * x * x)))


def _merge_encode_kernel(t_ref, k_ref, w_ref, b_ref, u_ref, *, wmeta):
    """knowledge_available=True: merger MLP (concat fused) + encoder MLP."""
    def W(i):
        off, sz = wmeta[i]          # static python ints -> zero-cost slice
        return w_ref[off:off + sz, :]

    def Bc(i):
        return b_ref[i:i + 1, :]    # (1, U) fp32, broadcasts over rows

    t = t_ref[...]                  # (TM, Dt) bf16
    k = k_ref[...]                  # (TM, Dk) bf16

    # merger layer 1: concat([t,k]) @ W1 == t @ W1_top + k @ W1_bot
    h = (jnp.dot(t, W(0), preferred_element_type=jnp.float32)
         + jnp.dot(k, W(1), preferred_element_type=jnp.float32) + Bc(0))
    h = _gelu_tanh(h)
    h = _gelu_tanh(jnp.dot(h.astype(jnp.bfloat16), W(2),
                           preferred_element_type=jnp.float32) + Bc(1))
    enc_in = jnp.dot(h.astype(jnp.bfloat16), W(3),
                     preferred_element_type=jnp.float32) + Bc(2)

    # understanding_encoder MLP
    h = _gelu_tanh(jnp.dot(enc_in.astype(jnp.bfloat16), W(4),
                           preferred_element_type=jnp.float32) + Bc(3))
    h = _gelu_tanh(jnp.dot(h.astype(jnp.bfloat16), W(5),
                           preferred_element_type=jnp.float32) + Bc(4))
    u_ref[...] = jnp.dot(h.astype(jnp.bfloat16), W(6),
                         preferred_element_type=jnp.float32) + Bc(5)


def _encode_only_kernel(t_ref, w_ref, b_ref, u_ref, *, wmeta):
    """knowledge_available=False: relu(t) -> encoder MLP (no merger params)."""
    def W(i):
        off, sz = wmeta[i]
        return w_ref[off:off + sz, :]

    def Bc(i):
        return b_ref[i:i + 1, :]

    enc_in = jnp.maximum(t_ref[...], 0).astype(jnp.bfloat16)   # relu(t)
    h = _gelu_tanh(jnp.dot(enc_in, W(0),
                           preferred_element_type=jnp.float32) + Bc(0))
    h = _gelu_tanh(jnp.dot(h.astype(jnp.bfloat16), W(1),
                           preferred_element_type=jnp.float32) + Bc(1))
    u_ref[...] = jnp.dot(h.astype(jnp.bfloat16), W(2),
                         preferred_element_type=jnp.float32) + Bc(2)


# ----------------------------- param packing --------------------------------

def _pad_rows(w, mult=16):
    """Pad a (rows, cols) weight to a multiple of `mult` rows (bf16 sublane
    packing) so every segment of the slab starts on a tile boundary."""
    pad = (-w.shape[0]) % mult
    if pad:
        w = jnp.concatenate([w, jnp.zeros((pad, w.shape[1]), w.dtype)], axis=0)
    return w


def pack_params(params, d_t, d_k, *, knowledge_available=True):
    """One-time packing: weights -> single bf16 slab, biases -> single fp32
    slab.  Also performs the mw1 split (concat fusion) so the per-call wrapper
    does no slicing."""
    U = params["ew3"].shape[1]
    if knowledge_available:
        w_list = [params["mw1"][:d_t], params["mw1"][d_t:],   # split merger W1
                  params["mw2"], params["mw3"],
                  params["ew1"], params["ew2"], params["ew3"]]
        b_list = [params["mb1"], params["mb2"], params["mb3"],
                  params["eb1"], params["eb2"], params["eb3"]]
    else:
        w_list = [params["ew1"], params["ew2"], params["ew3"]]
        b_list = [params["eb1"], params["eb2"], params["eb3"]]

    wmeta, padded, off = [], [], 0
    for w in w_list:
        wp = _pad_rows(w.astype(jnp.bfloat16))
        wmeta.append((off, int(w.shape[0])))
        padded.append(wp)
        off += int(wp.shape[0])
    w_slab = jnp.concatenate(padded, axis=0)                 # (sum rows, U) bf16
    b_slab = jnp.concatenate(b_list, axis=0).astype(jnp.float32)  # (n_b, U) fp32

    return dict(w=w_slab, b=b_slab, wmeta=tuple(wmeta), U=int(U),
                knowledge_available=bool(knowledge_available))


# ----------------------------- forward wrapper ------------------------------

def understanding_encoder_forward(t, k, packed):
    """t: (B, N, Dt), k: (B, N, Dk) -> u: (B, N, U)."""
    knowledge = packed["knowledge_available"]
    U = packed["U"]
    w_slab, b_slab, wmeta = packed["w"], packed["b"], packed["wmeta"]

    B, N, Dt = t.shape
    M = B * N
    t2 = t.reshape(M, Dt).astype(jnp.bfloat16)

    # Row tiling: single resident step at toy sizes, parallel M-tiles (both
    # v7x TensorCores, pipelined activations) once M gets large.
    TM = M
    for cand in (1024, 512, 256, 128):
        if M % cand == 0:
            TM = cand
            break
    grid = (M // TM,)

    wrows = w_slab.shape[0]
    nb = b_slab.shape[0]
    w_spec = pl.BlockSpec((wrows, U), lambda i: (0, 0))   # VMEM-resident
    b_spec = pl.BlockSpec((nb, U), lambda i: (0, 0))      # VMEM-resident
    out_spec = pl.BlockSpec((TM, U), lambda i: (i, 0))

    if knowledge:
        Dk = k.shape[-1]
        k2 = k.reshape(M, Dk).astype(jnp.bfloat16)
        args = (t2, k2, w_slab, b_slab)
        in_specs = [pl.BlockSpec((TM, Dt), lambda i: (i, 0)),
                    pl.BlockSpec((TM, Dk), lambda i: (i, 0)),
                    w_spec, b_spec]
        kernel = functools.partial(_merge_encode_kernel, wmeta=wmeta)
        flops = 2 * M * (Dt * U + Dk * U + 5 * U * U)
        transcendentals = 4 * M * U
    else:
        assert Dt == U, ("knowledge_available=False feeds relu(t) straight "
                         "into the encoder; requires Dt == U (as in PyTorch).")
        args = (t2, w_slab, b_slab)
        in_specs = [pl.BlockSpec((TM, Dt), lambda i: (i, 0)), w_spec, b_spec]
        kernel = functools.partial(_encode_only_kernel, wmeta=wmeta)
        flops = 2 * M * 3 * U * U
        transcendentals = 2 * M * U

    bytes_accessed = sum(int(a.size) * a.dtype.itemsize for a in args) + 4 * M * U

    out = pl.pallas_call(
        kernel,
        out_shape=jax.ShapeDtypeStruct((M, U), jnp.float32),
        grid=grid,
        in_specs=in_specs,
        out_specs=out_spec,
        compiler_params=pltpu.CompilerParams(
            dimension_semantics=("parallel",)),
        cost_estimate=pl.CostEstimate(flops=int(flops),
                                      transcendentals=int(transcendentals),
                                      bytes_accessed=int(bytes_accessed)),
    )(*args)
    return out.reshape(B, N, U)


# ----------------------------- pure-JAX reference ---------------------------

def _linear_bf16(x, w, b):
    # Mirrors the kernel numerics: bf16 MXU inputs, fp32 accumulate, fp32 bias.
    return jnp.dot(x.astype(jnp.bfloat16), w.astype(jnp.bfloat16),
                   preferred_element_type=jnp.float32) + b.astype(jnp.float32)


def understanding_encoder_ref(t, k, params, *, knowledge_available=True):
    B, N, Dt = t.shape
    t2 = t.reshape(B * N, Dt)
    k2 = k.reshape(B * N, k.shape[-1])
    if knowledge_available:
        x = jnp.concatenate([t2, k2], axis=-1)
        x = _gelu_tanh(_linear_bf16(x, params["mw1"], params["mb1"]))
        x = _gelu_tanh(_linear_bf16(x, params["mw2"], params["mb2"]))
        enc_in = _linear_bf16(x, params["mw3"], params["mb3"])
    else:
        enc_in = jnp.maximum(t2, 0.0)
    x = _gelu_tanh(_linear_bf16(enc_in, params["ew1"], params["eb1"]))
    x = _gelu_tanh(_linear_bf16(x, params["ew2"], params["eb2"]))
    u = _linear_bf16(x, params["ew3"], params["eb3"])
    return u.reshape(B, N, -1)


def init_params(key, d_t, d_k, d_u):
    """PyTorch-Linear-style init (uniform +-1/sqrt(fan_in)); weights stored
    pre-transposed as (in_features, out_features), biases as (1, out)."""
    keys = jax.random.split(key, 12)

    def lin(kw, kb, fan_in, fan_out):
        bound = 1.0 / jnp.sqrt(jnp.float32(fan_in))
        w = jax.random.uniform(kw, (fan_in, fan_out), jnp.float32, -bound, bound)
        b = jax.random.uniform(kb, (1, fan_out), jnp.float32, -bound, bound)
        return w, b

    mw1, mb1 = lin(keys[0], keys[1], d_t + d_k, d_u)   # merger layer 1
    mw2, mb2 = lin(keys[2], keys[3], d_u, d_u)         # merger layer 2
    mw3, mb3 = lin(keys[4], keys[5], d_u, d_u)         # merger output
    ew1, eb1 = lin(keys[6], keys[7], d_u, d_u)         # encoder layer 1
    ew2, eb2 = lin(keys[8], keys[9], d_u, d_u)         # encoder layer 2
    ew3, eb3 = lin(keys[10], keys[11], d_u, d_u)       # encoder output
    return dict(mw1=mw1, mb1=mb1, mw2=mw2, mb2=mb2, mw3=mw3, mb3=mb3,
                ew1=ew1, eb1=eb1, ew2=ew2, eb2=eb2, ew3=ew3, eb3=eb3)


if __name__ == "__main__":
    # batch=2, set of 8 context points, representation dims = 32.
    B, N = 2, 8
    Dt = Dk = U = 32

    key = jax.random.PRNGKey(0)
    kt, kk, kp = jax.random.split(key, 3)
    t = jax.random.normal(kt, (B, N, Dt), jnp.float32)
    k = jax.random.normal(kk, (B, N, Dk), jnp.float32)
    params = init_params(kp, Dt, Dk, U)

    # knowledge_available = True: merger MLP + encoder MLP.
    packed_k = pack_params(params, Dt, Dk, knowledge_available=True)
    out = understanding_encoder_forward(t, k, packed_k)
    out = jax.block_until_ready(out)
    ref = understanding_encoder_ref(t, k, params, knowledge_available=True)
    assert out.shape == (B, N, U)
    assert jnp.allclose(out, ref, atol=5e-3, rtol=5e-3), "mismatch (knowledge=True)"

    # knowledge_available = False: relu(t) -> encoder MLP (merger params never
    # transferred).
    packed_nk = pack_params(params, Dt, Dk, knowledge_available=False)
    out_nk = understanding_encoder_forward(t, k, packed_nk)
    out_nk = jax.block_until_ready(out_nk)
    ref_nk = understanding_encoder_ref(t, k, params, knowledge_available=False)
    assert jnp.allclose(out_nk, ref_nk, atol=5e-3, rtol=5e-3), \
        "mismatch (knowledge=False)"

    print("KERNEL_OK")
</pallas_src>

<mosaic_0001>
module attributes {stable_mosaic.version = 11 : i64} {
  func.func @_merge_encode_kernel(%arg0: i32, %arg1: memref<16x32xbf16, #tpu.memory_space<vmem>>, %arg2: memref<16x32xbf16, #tpu.memory_space<vmem>>, %arg3: memref<224x32xbf16, #tpu.memory_space<vmem>>, %arg4: memref<6x32xf32, #tpu.memory_space<vmem>>, %arg5: memref<16x32xf32, #tpu.memory_space<vmem>>) attributes {dimension_semantics = [#tpu.dimension_semantics<parallel>], iteration_bounds = array<i64: 1>, scalar_prefetch = 0 : i64, scratch_operands = 0 : i64, tpu.core_type = #tpu.core_type<tc>, window_params = [{transform_indices = @transform_0, window_bounds = array<i64: 16, 32>}, {transform_indices = @transform_1, window_bounds = array<i64: 16, 32>}, {pipeline_mode = #tpu.pipeline_mode<synchronous>, transform_indices = @transform_2, window_bounds = array<i64: 224, 32>}, {pipeline_mode = #tpu.pipeline_mode<synchronous>, transform_indices = @transform_3, window_bounds = array<i64: 6, 32>}, {transform_indices = @transform_4, window_bounds = array<i64: 16, 32>}]} {
    %c0 = arith.constant 0 : index
    %c0_0 = arith.constant 0 : index
    %0 = vector.load %arg1[%c0, %c0_0] : memref<16x32xbf16, #tpu.memory_space<vmem>>, vector<16x32xbf16>
    %c0_1 = arith.constant 0 : index
    %c0_2 = arith.constant 0 : index
    %1 = vector.load %arg2[%c0_1, %c0_2] : memref<16x32xbf16, #tpu.memory_space<vmem>>, vector<16x32xbf16>
    %c0_3 = arith.constant 0 : index
    %c0_4 = arith.constant 0 : index
    %2 = vector.load %arg3[%c0_3, %c0_4] : memref<224x32xbf16, #tpu.memory_space<vmem>>, vector<32x32xbf16>
    %cst = arith.constant dense<0.000000e+00> : vector<16x32xf32>
    %3 = tpu.matmul %0, %2, %cst {dimension_numbers = #tpu.dot_dimension_numbers<[1], [0], [0], [1], [0, 0, 1, 1], [], []>} : vector<16x32xbf16>, vector<32x32xbf16>, vector<16x32xf32> -> vector<16x32xf32>
    %c32 = arith.constant 32 : index
    %c0_5 = arith.constant 0 : index
    %4 = vector.load %arg3[%c32, %c0_5] : memref<224x32xbf16, #tpu.memory_space<vmem>>, vector<32x32xbf16>
    %cst_6 = arith.constant dense<0.000000e+00> : vector<16x32xf32>
    %5 = tpu.matmul %1, %4, %cst_6 {dimension_numbers = #tpu.dot_dimension_numbers<[1], [0], [0], [1], [0, 0, 1, 1], [], []>} : vector<16x32xbf16>, vector<32x32xbf16>, vector<16x32xf32> -> vector<16x32xf32>
    %6 = arith.addf %3, %5 : vector<16x32xf32>
    %c0_7 = arith.constant 0 : index
    %c0_8 = arith.constant 0 : index
    %7 = vector.load %arg4[%c0_7, %c0_8] : memref<6x32xf32, #tpu.memory_space<vmem>>, vector<1x32xf32>
    %8 = vector.broadcast %7 : vector<1x32xf32> to vector<16x32xf32>
    %9 = arith.addf %6, %8 : vector<16x32xf32>
    %cst_9 = arith.constant 5.000000e-01 : f32
    %10 = vector.broadcast %cst_9 : f32 to vector<16x32xf32>
    %11 = arith.mulf %10, %9 : vector<16x32xf32>
    %cst_10 = arith.constant 4.471500e-02 : f32
    %12 = vector.broadcast %cst_10 : f32 to vector<16x32xf32>
    %13 = arith.mulf %12, %9 : vector<16x32xf32>
    %14 = arith.mulf %13, %9 : vector<16x32xf32>
    %15 = arith.mulf %14, %9 : vector<16x32xf32>
    %16 = arith.addf %9, %15 : vector<16x32xf32>
    %cst_11 = arith.constant 0.797884583 : f32
    %17 = vector.broadcast %cst_11 : f32 to vector<16x32xf32>
    %18 = arith.mulf %17, %16 : vector<16x32xf32>
    %19 = math.tanh %18 : vector<16x32xf32>
    %cst_12 = arith.constant 1.000000e+00 : f32
    %20 = vector.broadcast %cst_12 : f32 to vector<16x32xf32>
    %21 = arith.addf %20, %19 : vector<16x32xf32>
    %22 = arith.mulf %11, %21 : vector<16x32xf32>
    %23 = arith.truncf %22 : vector<16x32xf32> to vector<16x32xbf16>
    %c64 = arith.constant 64 : index
    %c0_13 = arith.constant 0 : index
    %24 = vector.load %arg3[%c64, %c0_13] : memref<224x32xbf16, #tpu.memory_space<vmem>>, vector<32x32xbf16>
    %cst_14 = arith.constant dense<0.000000e+00> : vector<16x32xf32>
    %25 = tpu.matmul %23, %24, %cst_14 {dimension_numbers = #tpu.dot_dimension_numbers<[1], [0], [0], [1], [0, 0, 1, 1], [], []>} : vector<16x32xbf16>, vector<32x32xbf16>, vector<16x32xf32> -> vector<16x32xf32>
    %c1 = arith.constant 1 : index
    %c0_15 = arith.constant 0 : index
    %26 = vector.load %arg4[%c1, %c0_15] : memref<6x32xf32, #tpu.memory_space<vmem>>, vector<1x32xf32>
    %27 = vector.broadcast %26 : vector<1x32xf32> to vector<16x32xf32>
    %28 = arith.addf %25, %27 : vector<16x32xf32>
    %cst_16 = arith.constant 5.000000e-01 : f32
    %29 = vector.broadcast %cst_16 : f32 to vector<16x32xf32>
    %30 = arith.mulf %29, %28 : vector<16x32xf32>
    %cst_17 = arith.constant 4.471500e-02 : f32
    %31 = vector.broadcast %cst_17 : f32 to vector<16x32xf32>
    %32 = arith.mulf %31, %28 : vector<16x32xf32>
    %33 = arith.mulf %32, %28 : vector<16x32xf32>
    %34 = arith.mulf %33, %28 : vector<16x32xf32>
    %35 = arith.addf %28, %34 : vector<16x32xf32>
    %cst_18 = arith.constant 0.797884583 : f32
    %36 = vector.broadcast %cst_18 : f32 to vector<16x32xf32>
    %37 = arith.mulf %36, %35 : vector<16x32xf32>
    %38 = math.tanh %37 : vector<16x32xf32>
    %cst_19 = arith.constant 1.000000e+00 : f32
    %39 = vector.broadcast %cst_19 : f32 to vector<16x32xf32>
    %40 = arith.addf %39, %38 : vector<16x32xf32>
    %41 = arith.mulf %30, %40 : vector<16x32xf32>
    %42 = arith.truncf %41 : vector<16x32xf32> to vector<16x32xbf16>
    %c96 = arith.constant 96 : index
    %c0_20 = arith.constant 0 : index
    %43 = vector.load %arg3[%c96, %c0_20] : memref<224x32xbf16, #tpu.memory_space<vmem>>, vector<32x32xbf16>
    %cst_21 = arith.constant dense<0.000000e+00> : vector<16x32xf32>
    %44 = tpu.matmul %42, %43, %cst_21 {dimension_numbers = #tpu.dot_dimension_numbers<[1], [0], [0], [1], [0, 0, 1, 1], [], []>} : vector<16x32xbf16>, vector<32x32xbf16>, vector<16x32xf32> -> vector<16x32xf32>
    %c2 = arith.constant 2 : index
    %c0_22 = arith.constant 0 : index
    %45 = vector.load %arg4[%c2, %c0_22] : memref<6x32xf32, #tpu.memory_space<vmem>>, vector<1x32xf32>
    %46 = vector.broadcast %45 : vector<1x32xf32> to vector<16x32xf32>
    %47 = arith.addf %44, %46 : vector<16x32xf32>
    %48 = arith.truncf %47 : vector<16x32xf32> to vector<16x32xbf16>
    %c128 = arith.constant 128 : index
    %c0_23 = arith.constant 0 : index
    %49 = vector.load %arg3[%c128, %c0_23] : memref<224x32xbf16, #tpu.memory_space<vmem>>, vector<32x32xbf16>
    %cst_24 = arith.constant dense<0.000000e+00> : vector<16x32xf32>
    %50 = tpu.matmul %48, %49, %cst_24 {dimension_numbers = #tpu.dot_dimension_numbers<[1], [0], [0], [1], [0, 0, 1, 1], [], []>} : vector<16x32xbf16>, vector<32x32xbf16>, vector<16x32xf32> -> vector<16x32xf32>
    %c3 = arith.constant 3 : index
    %c0_25 = arith.constant 0 : index
    %51 = vector.load %arg4[%c3, %c0_25] : memref<6x32xf32, #tpu.memory_space<vmem>>, vector<1x32xf32>
    %52 = vector.broadcast %51 : vector<1x32xf32> to vector<16x32xf32>
    %53 = arith.addf %50, %52 : vector<16x32xf32>
    %cst_26 = arith.constant 5.000000e-01 : f32
    %54 = vector.broadcast %cst_26 : f32 to vector<16x32xf32>
    %55 = arith.mulf %54, %53 : vector<16x32xf32>
    %cst_27 = arith.constant 4.471500e-02 : f32
    %56 = vector.broadcast %cst_27 : f32 to vector<16x32xf32>
    %57 = arith.mulf %56, %53 : vector<16x32xf32>
    %58 = arith.mulf %57, %53 : vector<16x32xf32>
    %59 = arith.mulf %58, %53 : vector<16x32xf32>
    %60 = arith.addf %53, %59 : vector<16x32xf32>
    %cst_28 = arith.constant 0.797884583 : f32
    %61 = vector.broadcast %cst_28 : f32 to vector<16x32xf32>
    %62 = arith.mulf %61, %60 : vector<16x32xf32>
    %63 = math.tanh %62 : vector<16x32xf32>
    %cst_29 = arith.constant 1.000000e+00 : f32
    %64 = vector.broadcast %cst_29 : f32 to vector<16x32xf32>
    %65 = arith.addf %64, %63 : vector<16x32xf32>
    %66 = arith.mulf %55, %65 : vector<16x32xf32>
    %67 = arith.truncf %66 : vector<16x32xf32> to vector<16x32xbf16>
    %c160 = arith.constant 160 : index
    %c0_30 = arith.constant 0 : index
    %68 = vector.load %arg3[%c160, %c0_30] : memref<224x32xbf16, #tpu.memory_space<vmem>>, vector<32x32xbf16>
    %cst_31 = arith.constant dense<0.000000e+00> : vector<16x32xf32>
    %69 = tpu.matmul %67, %68, %cst_31 {dimension_numbers = #tpu.dot_dimension_numbers<[1], [0], [0], [1], [0, 0, 1, 1], [], []>} : vector<16x32xbf16>, vector<32x32xbf16>, vector<16x32xf32> -> vector<16x32xf32>
    %c4 = arith.constant 4 : index
    %c0_32 = arith.constant 0 : index
    %70 = vector.load %arg4[%c4, %c0_32] : memref<6x32xf32, #tpu.memory_space<vmem>>, vector<1x32xf32>
    %71 = vector.broadcast %70 : vector<1x32xf32> to vector<16x32xf32>
    %72 = arith.addf %69, %71 : vector<16x32xf32>
    %cst_33 = arith.constant 5.000000e-01 : f32
    %73 = vector.broadcast %cst_33 : f32 to vector<16x32xf32>
    %74 = arith.mulf %73, %72 : vector<16x32xf32>
    %cst_34 = arith.constant 4.471500e-02 : f32
    %75 = vector.broadcast %cst_34 : f32 to vector<16x32xf32>
    %76 = arith.mulf %75, %72 : vector<16x32xf32>
    %77 = arith.mulf %76, %72 : vector<16x32xf32>
    %78 = arith.mulf %77, %72 : vector<16x32xf32>
    %79 = arith.addf %72, %78 : vector<16x32xf32>
    %cst_35 = arith.constant 0.797884583 : f32
    %80 = vector.broadcast %cst_35 : f32 to vector<16x32xf32>
    %81 = arith.mulf %80, %79 : vector<16x32xf32>
    %82 = math.tanh %81 : vector<16x32xf32>
    %cst_36 = arith.constant 1.000000e+00 : f32
    %83 = vector.broadcast %cst_36 : f32 to vector<16x32xf32>
    %84 = arith.addf %83, %82 : vector<16x32xf32>
    %85 = arith.mulf %74, %84 : vector<16x32xf32>
    %86 = arith.truncf %85 : vector<16x32xf32> to vector<16x32xbf16>
    %c192 = arith.constant 192 : index
    %c0_37 = arith.constant 0 : index
    %87 = vector.load %arg3[%c192, %c0_37] : memref<224x32xbf16, #tpu.memory_space<vmem>>, vector<32x32xbf16>
    %cst_38 = arith.constant dense<0.000000e+00> : vector<16x32xf32>
    %88 = tpu.matmul %86, %87, %cst_38 {dimension_numbers = #tpu.dot_dimension_numbers<[1], [0], [0], [1], [0, 0, 1, 1], [], []>} : vector<16x32xbf16>, vector<32x32xbf16>, vector<16x32xf32> -> vector<16x32xf32>
    %c5 = arith.constant 5 : index
    %c0_39 = arith.constant 0 : index
    %89 = vector.load %arg4[%c5, %c0_39] : memref<6x32xf32, #tpu.memory_space<vmem>>, vector<1x32xf32>
    %90 = vector.broadcast %89 : vector<1x32xf32> to vector<16x32xf32>
    %91 = arith.addf %88, %90 : vector<16x32xf32>
    %c0_40 = arith.constant 0 : index
    %c0_41 = arith.constant 0 : index
    %92 = vector.load %arg5[%c0_40, %c0_41] : memref<16x32xf32, #tpu.memory_space<vmem>>, vector<16x32xf32>
    tpu.vector_store %arg5[%c0_40, %c0_41], %91 {strides = array<i32>} : memref<16x32xf32, #tpu.memory_space<vmem>>, vector<16x32xf32>,
    return
  }
  func.func @transform_0(%arg0: i32) -> (i32, i32) {
    %c0_i32 = arith.constant 0 : i32
    %c0_i32_0 = arith.constant 0 : i32
    return %arg0, %c0_i32 : i32, i32
  }
  func.func @transform_1(%arg0: i32) -> (i32, i32) {
    %c0_i32 = arith.constant 0 : i32
    %c0_i32_0 = arith.constant 0 : i32
    return %arg0, %c0_i32 : i32, i32
  }
  func.func @transform_2(%arg0: i32) -> (i32, i32) {
    %c0_i32 = arith.constant 0 : i32
    %c0_i32_0 = arith.constant 0 : i32
    %c0_i32_1 = arith.constant 0 : i32
    return %c0_i32, %c0_i32_0 : i32, i32
  }
  func.func @transform_3(%arg0: i32) -> (i32, i32) {
    %c0_i32 = arith.constant 0 : i32
    %c0_i32_0 = arith.constant 0 : i32
    %c0_i32_1 = arith.constant 0 : i32
    return %c0_i32, %c0_i32_0 : i32, i32
  }
  func.func @transform_4(%arg0: i32) -> (i32, i32) {
    %c0_i32 = arith.constant 0 : i32
    %c0_i32_0 = arith.constant 0 : i32
    return %arg0, %c0_i32 : i32, i32
  }
}

</mosaic_0001>

<bundles_post_ra>
// kernel: tpu_custom_call.1
= control target key start
LH: loop header
LB: loop body
LE: loop exit
PB: predicated region body
PF: predicated region fallthrough
CT: control target
= control target key end

     0   :  { %v748_v1 = vmov 0.0   ;;  %vm749_vm0 = vmmov 0   ;;  %vm48_vm1 = vcmask 261120   ;;  %s893_s0 = inlined_call_operand.vmem [shape: bf16[16,32], index: 0, kind: input, shape index: {}]   ;;  %s894_s1 = inlined_call_operand.vmem [shape: bf16[16,32], index: 1, kind: input, shape index: {}]   ;;  %s895_s2 = inlined_call_operand.vmem [shape: bf16[224,32], index: 2, kind: input, shape index: {}]   ;;  %s896_s3 = inlined_call_operand.vmem [shape: f32[6,32], index: 3, kind: input, shape index: {}]   ;;  %s897_s4 = inlined_call_operand.hbm [shape: f32[16,32], index: 4, kind: output, shape index: {}]  }
   0x1   :  { %v692_v0 = vld [vmem:[%s895_s2 + $0x10] sm:$0xff]   ;;  %631 = vmatprep.subr.bf16.mxu0 %v748_v1  ;;  %639 = vmatprep.subr.bf16.mxu1 %v748_v1  ;;  %v693_v2 = vld [vmem:[%s895_s2] sm:$0xff]   ;;  %v694_v3 = vld [vmem:[%s895_s2 + $0x18] sm:$0xff]  }
   0x2   :  { %632 = vmatpush3.bf16.msra.mxu0 %v692_v0  ;;  %635 = vmatprep.mubr.msk.bf16.mxu0 %vm749_vm0, %v748_v1  ;;  %v695_v4 = vld [vmem:[%s895_s2 + $0x8] sm:$0xff]   ;;  %v696_v5 = vld [vmem:[%s894_s1] sm:$0xff]  }
   0x3   :  { %640 = vmatpush3.bf16.msra.mxu1 %v693_v2  ;;  %633 = vmatprep.subr.bf16.mxu0 %v748_v1  ;;  %v697_v6 = vld [vmem:[%s893_s0] sm:$0xff]  }
   0x4   :  { %641 = vmatprep.subr.bf16.mxu1 %v748_v1  ;;  %643 = vmatprep.mubr.msk.bf16.mxu1 %vm749_vm0, %v748_v1 }
   0x6   :  { %634 = vmatpush3.bf16.msra.mxu0 %v694_v3 }
   0x7   :  { %642 = vmatpush3.bf16.msra.mxu1 %v695_v4  ;;  %647 = vmatprep.subr.bf16.mxu0 %v748_v1 }
   0x8   :  { %655 = vmatprep.subr.bf16.mxu1 %v748_v1 }
   0x9   :  { %636 = vmatmul.mubr.msk.bf16.vlgmr.msra.gmra.mrb[0].mxu0 %vm48_vm1, %v696_v5 }
   0xa   :  { %644 = vmatmul.mubr.msk.bf16.vlgmr.msra.gmra.mrb[0].mxu1 %vm48_vm1, %v697_v6  ;;  %651 = vmatprep.mubr.msk.bf16.mxu0 %vm749_vm0, %v748_v1 }
   0xb   :  { %659 = vmatprep.mubr.msk.bf16.mxu1 %vm749_vm0, %v748_v1 }
   0xc   :  { %9 = vsyncpa [#allocation3], 0  ;;  %v698_v7 = vld [vmem:[%s895_s2 + $0x20] sm:$0xff]   ;;  %v699_v8 = vld [vmem:[%s895_s2 + $0x28] sm:$0xff]   ;;  %s750_s28 = smov [#allocation2]  }
   0xd   :  { %648 = vmatpush3.bf16.msra.mxu0 %v698_v7  ;;  %v589_v11 = vld [vmem:[%s896_s3] ss:$0 sm:$0xff]  ;;  %v700_v41 = vld [vmem:[%s895_s2 + $0x30] sm:$0xff]   ;;  %v701_v42 = vld [vmem:[%s895_s2 + $0x38] sm:$0xff]   ;;  %s570_s29 = sshll.u32 %s750_s28, 4  ;;  %s571_s29 = int_to_ptr.vmem [resolvable:$true] %s570_s29 }
   0xe   :  { %649 = vmatprep.subr.bf16.mxu0 %v748_v1  ;;  %656 = vmatpush3.bf16.msra.mxu1 %v700_v41  ;;  %v702_v43 = vld [vmem:[%s895_s2 + $0x40] sm:$0xff]   ;;  %v703_v7 = vld [vmem:[%s895_s2 + $0x48] sm:$0xff]   ;;  %s724_s30 = scalar_lea.vmem %s571_s29, 256  ;;  %p729_p1 = scmp.lt.s32.totalorder %s571_s29, %s571_s29 }
   0xf   :  { %657 = vmatprep.subr.bf16.mxu1 %v748_v1  ;;  %v590_v44 = vld [vmem:[%s896_s3 + $0x1] ss:$0 sm:$0xff]  ;;  %p725_p0 = scmp.ne.s32.totalorder %s571_s29, %s724_s30  ;;  %p730_p2 = scmp.lt.s32.totalorder %s724_s30, %s724_s30 }
  0x11   :  { %650 = vmatpush3.bf16.msra.mxu0 %v699_v8  ;;  %v594_v8 = vld [vmem:[%s896_s3 + $0x2] ss:$0 sm:$0xff]  ;;  %p731_p3 = por %p730_p2, %p729_p1 }
  0x12   :  { %663 = vmatprep.subr.bf16.mxu0 %v748_v1  ;;  %658 = vmatpush3.bf16.msra.mxu1 %v701_v42 }
  0x13   :  { %671 = vmatprep.subr.bf16.mxu1 %v748_v1  ;;  %p732_p4 = pnand %p731_p3, %p725_p0 }
  0xdc   :  { %v86_v9 = vpop.f32.mrb[0].mxu0 }
  0xdd   :  { %v147_v10 = vpop.f32.mrb[0].mxu1  ;;  %v637_v12 = vpop.f32.mrb[1].mxu0 }
  0xde   :  { %v148_v13 = vadd.f32 %v147_v10, %v86_v9  ;;  %v645_v14 = vpop.f32.mrb[1].mxu1  ;;  %v89_v15 = vpop.f32.mrb[2].mxu0 }
  0xdf   :  { %v150_v16 = vpop.f32.mrb[2].mxu1  ;;  %v638_v17 = vpop.f32.mrb[3].mxu0 }
  0xe0   :  { %v159_v18 = vadd.f32 %v589_v11, %v148_v13  ;;  %v151_v19 = vadd.f32 %v150_v16, %v89_v15  ;;  %v646_v20 = vpop.f32.mrb[3].mxu1  ;;  %v704_v16 = vld [vmem:[%s895_s2 + $0x50] sm:$0xff]   ;;  %v705_v17 = vld [vmem:[%s895_s2 + $0x58] sm:$0xff]  }
  0xe2   :  { %v163_v21 = vmul.f32 0.044715, %v159_v18  ;;  %v160_v22 = vadd.f32 %v589_v11, %v151_v19  ;;  %v161_v35 = vmul.f32 0.5, %v159_v18 }
  0xe4   :  { %v165_v23 = vmul.f32 %v163_v21, %v159_v18  ;;  %v164_v24 = vmul.f32 0.044715, %v160_v22  ;;  %v162_v36 = vmul.f32 0.5, %v160_v22 }
  0xe6   :  { %v167_v25 = vmul.f32 %v165_v23, %v159_v18  ;;  %v166_v26 = vmul.f32 %v164_v24, %v160_v22 }
  0xe8   :  { %v169_v27 = vadd.f32 %v167_v25, %v159_v18  ;;  %v168_v28 = vmul.f32 %v166_v26, %v160_v22  ;;  %v598_v18 = vld [vmem:[%s896_s3 + $0x3] ss:$0 sm:$0xff] }
  0xea   :  { %v171_v29 = vmul.f32 0.7978846, %v169_v27  ;;  %v170_v30 = vadd.f32 %v168_v28, %v160_v22 }
  0xec   :  { %708 = vtanh.f32 %v171_v29  ;;  %v172_v31 = vmul.f32 0.7978846, %v170_v30 }
  0xee   :  { %710 = vtanh.f32 %v172_v31 }
  0xf6   :  { %v709_v32 = vpop.eup %708 }
  0xf7   :  { %v175_v33 = vadd.f32 1.0, %v709_v32 }
  0xf8   :  { %v711_v34 = vpop.eup %710 }
  0xf9   :  { %v176_v37 = vadd.f32 1.0, %v711_v34  ;;  %v177_v38 = vmul.f32 %v175_v33, %v161_v35 }
  0xfb   :  { %v178_v39 = vmul.f32 %v176_v37, %v162_v36 }
  0xfd   :  { %v179_v40 = vpack.c.bf16 %v178_v39, %v177_v38 }
  0xff   :  { %652 = vmatmul.mubr.msk.bf16.vlgmr.msra.gmra.mrb[4].mxu0 %vm48_vm1, %v179_v40 }
 0x100   :  { %667 = vmatprep.mubr.msk.bf16.mxu0 %vm749_vm0, %v748_v1  ;;  %664 = vmatpush3.bf16.msra.mxu0 %v702_v43 }
 0x101   :  { %665 = vmatprep.subr.bf16.mxu0 %v748_v1 }
 0x104   :  { %666 = vmatpush3.bf16.msra.mxu0 %v703_v7 }
 0x105   :  { %679 = vmatprep.subr.bf16.mxu0 %v748_v1 }
 0x1d2   :  { %v238_v45 = vpop.f32.mrb[4].mxu0 }
 0x1d3   :  { %v239_v46 = vadd.f32 %v590_v44, %v238_v45  ;;  %v653_v47 = vpop.f32.mrb[5].mxu0  ;;  %v707_v45 = vld [vmem:[%s895_s2 + $0x68] sm:$0xff]  }
 0x1d4   :  { %v241_v48 = vpop.f32.mrb[6].mxu0 }
 0x1d5   :  { %v247_v49 = vmul.f32 0.044715, %v239_v46  ;;  %v242_v50 = vadd.f32 %v590_v44, %v241_v48  ;;  %v654_v51 = vpop.f32.mrb[7].mxu0  ;;  %v245_v0 = vmul.f32 0.5, %v239_v46  ;;  %v706_v44 = vld [vmem:[%s895_s2 + $0x60] sm:$0xff]  }
 0x1d7   :  { %v249_v52 = vmul.f32 %v247_v49, %v239_v46  ;;  %v248_v53 = vmul.f32 0.044715, %v242_v50  ;;  %v246_v2 = vmul.f32 0.5, %v242_v50 }
 0x1d9   :  { %v251_v54 = vmul.f32 %v249_v52, %v239_v46  ;;  %v250_v55 = vmul.f32 %v248_v53, %v242_v50 }
 0x1db   :  { %v253_v56 = vadd.f32 %v251_v54, %v239_v46  ;;  %v252_v57 = vmul.f32 %v250_v55, %v242_v50  ;;  %v602_v46 = vld [vmem:[%s896_s3 + $0x4] ss:$0 sm:$0xff] }
 0x1dd   :  { %v255_v58 = vmul.f32 0.7978846, %v253_v56  ;;  %v254_v59 = vadd.f32 %v252_v57, %v242_v50 }
 0x1df   :  { %712 = vtanh.f32 %v255_v58  ;;  %v256_v60 = vmul.f32 0.7978846, %v254_v59 }
 0x1e1   :  { %714 = vtanh.f32 %v256_v60 }
 0x1e9   :  { %v713_v61 = vpop.eup %712 }
 0x1ea   :  { %v259_v62 = vadd.f32 1.0, %v713_v61 }
 0x1eb   :  { %v715_v63 = vpop.eup %714 }
 0x1ec   :  { %v260_v3 = vadd.f32 1.0, %v715_v63  ;;  %v261_v4 = vmul.f32 %v259_v62, %v245_v0 }
 0x1ee   :  { %v262_v5 = vmul.f32 %v260_v3, %v246_v2 }
 0x1f0   :  { %v263_v6 = vpack.c.bf16 %v262_v5, %v261_v4 }
 0x1f2   :  { %660 = vmatmul.mubr.msk.bf16.vlgmr.msra.gmra.mrb[4].mxu1 %vm48_vm1, %v263_v6 }
 0x1f3   :  { %675 = vmatprep.mubr.msk.bf16.mxu1 %vm749_vm0, %v748_v1  ;;  %672 = vmatpush3.bf16.msra.mxu1 %v704_v16 }
 0x1f4   :  { %673 = vmatprep.subr.bf16.mxu1 %v748_v1 }
 0x1f7   :  { %674 = vmatpush3.bf16.msra.mxu1 %v705_v17 }
 0x2c5   :  { %v322_v9 = vpop.f32.mrb[4].mxu1 }
 0x2c6   :  { %v661_v10 = vpop.f32.mrb[5].mxu1  ;;  %v323_v12 = vadd.f32 %v594_v8, %v322_v9 }
 0x2c7   :  { %v325_v11 = vpop.f32.mrb[6].mxu1 }
 0x2c8   :  { %v326_v13 = vadd.f32 %v594_v8, %v325_v11  ;;  %v662_v14 = vpop.f32.mrb[7].mxu1  ;;  %v606_v8 = vld [vmem:[%s896_s3 + $0x5] ss:$0 sm:$0xff] }
 0x2ca   :  { %v329_v15 = vpack.c.bf16 %v326_v13, %v323_v12 }
 0x2cc   :  { %668 = vmatmul.mubr.msk.bf16.vlgmr.msra.gmra.mrb[8].mxu0 %vm48_vm1, %v329_v15 }
 0x2cd   :  { %683 = vmatprep.mubr.msk.bf16.mxu0 %vm749_vm0, %v748_v1  ;;  %680 = vmatpush3.bf16.msra.mxu0 %v706_v44 }
 0x2ce   :  { %681 = vmatprep.subr.bf16.mxu0 %v748_v1 }
 0x2d1   :  { %682 = vmatpush3.bf16.msra.mxu0 %v707_v45 }
 0x39f   :  { %v388_v19 = vpop.f32.mrb[8].mxu0 }
 0x3a0   :  { %v389_v20 = vadd.f32 %v598_v18, %v388_v19  ;;  %v669_v21 = vpop.f32.mrb[9].mxu0 }
 0x3a1   :  { %v391_v22 = vpop.f32.mrb[10].mxu0 }
 0x3a2   :  { %v397_v23 = vmul.f32 0.044715, %v389_v20  ;;  %v392_v24 = vadd.f32 %v598_v18, %v391_v22  ;;  %v670_v25 = vpop.f32.mrb[11].mxu0  ;;  %v395_v38 = vmul.f32 0.5, %v389_v20 }
 0x3a4   :  { %v399_v26 = vmul.f32 %v397_v23, %v389_v20  ;;  %v398_v27 = vmul.f32 0.044715, %v392_v24  ;;  %v396_v39 = vmul.f32 0.5, %v392_v24 }
 0x3a6   :  { %v401_v28 = vmul.f32 %v399_v26, %v389_v20  ;;  %v400_v29 = vmul.f32 %v398_v27, %v392_v24 }
 0x3a8   :  { %v403_v30 = vadd.f32 %v401_v28, %v389_v20  ;;  %v402_v31 = vmul.f32 %v400_v29, %v392_v24 }
 0x3aa   :  { %v405_v32 = vmul.f32 0.7978846, %v403_v30  ;;  %v404_v33 = vadd.f32 %v402_v31, %v392_v24 }
 0x3ac   :  { %716 = vtanh.f32 %v405_v32  ;;  %v406_v34 = vmul.f32 0.7978846, %v404_v33 }
 0x3ae   :  { %718 = vtanh.f32 %v406_v34 }
 0x3b6   :  { %v717_v35 = vpop.eup %716 }
 0x3b7   :  { %v409_v36 = vadd.f32 1.0, %v717_v35 }
 0x3b8   :  { %v719_v37 = vpop.eup %718 }
 0x3b9   :  { %v410_v40 = vadd.f32 1.0, %v719_v37  ;;  %v411_v41 = vmul.f32 %v409_v36, %v395_v38 }
 0x3bb   :  { %v412_v42 = vmul.f32 %v410_v40, %v396_v39 }
 0x3bd   :  { %v413_v43 = vpack.c.bf16 %v412_v42, %v411_v41 }
 0x3bf   :  { %676 = vmatmul.mubr.msk.bf16.vlgmr.msra.gmra.mrb[8].mxu1 %vm48_vm1, %v413_v43 }
 0x492   :  { %v472_v47 = vpop.f32.mrb[8].mxu1 }
 0x493   :  { %v473_v48 = vadd.f32 %v602_v46, %v472_v47  ;;  %v677_v49 = vpop.f32.mrb[9].mxu1 }
 0x494   :  { %v475_v50 = vpop.f32.mrb[10].mxu1 }
 0x495   :  { %v481_v51 = vmul.f32 0.044715, %v473_v48  ;;  %v476_v52 = vadd.f32 %v602_v46, %v475_v50  ;;  %v678_v53 = vpop.f32.mrb[11].mxu1  ;;  %v479_v2 = vmul.f32 0.5, %v473_v48 }
 0x497   :  { %v483_v54 = vmul.f32 %v481_v51, %v473_v48  ;;  %v482_v55 = vmul.f32 0.044715, %v476_v52  ;;  %v480_v3 = vmul.f32 0.5, %v476_v52 }
 0x499   :  { %v485_v56 = vmul.f32 %v483_v54, %v473_v48  ;;  %v484_v57 = vmul.f32 %v482_v55, %v476_v52 }
 0x49b   :  { %v487_v58 = vadd.f32 %v485_v56, %v473_v48  ;;  %v486_v59 = vmul.f32 %v484_v57, %v476_v52 }
 0x49d   :  { %v489_v60 = vmul.f32 0.7978846, %v487_v58  ;;  %v488_v1 = vadd.f32 %v486_v59, %v476_v52 }
 0x49f   :  { %720 = vtanh.f32 %v489_v60  ;;  %v490_v61 = vmul.f32 0.7978846, %v488_v1 }
 0x4a1   :  { %722 = vtanh.f32 %v490_v61 }
 0x4a9   :  { %v721_v62 = vpop.eup %720 }
 0x4aa   :  { %v493_v63 = vadd.f32 1.0, %v721_v62 }
 0x4ab   :  { %v723_v0 = vpop.eup %722 }
 0x4ac   :  { %v494_v4 = vadd.f32 1.0, %v723_v0  ;;  %v495_v5 = vmul.f32 %v493_v63, %v479_v2 }
 0x4ae   :  { %v496_v6 = vmul.f32 %v494_v4, %v480_v3 }
 0x4b0   :  { %v497_v7 = vpack.c.bf16 %v496_v6, %v495_v5 }
 0x4b2   :  { %684 = vmatmul.mubr.msk.bf16.vlgmr.msra.gmra.mrb[12].mxu0 %vm48_vm1, %v497_v7 }
 0x585   :  { %v556_v9 = vpop.f32.mrb[12].mxu0 }
 0x586   :  { %v557_v10 = vadd.f32 %v606_v8, %v556_v9  ;;  %v685_v11 = vpop.f32.mrb[13].mxu0 }
 0x587   :  { %v559_v12 = vpop.f32.mrb[14].mxu0 }
 0x588   :  { %563 = vst.msk [vmem:[#allocation2] sm:$0xff] %vm48_vm1, %v557_v10  ;;  %v560_v13 = vadd.f32 %v606_v8, %v559_v12  ;;  %v686_v14 = vpop.f32.mrb[15].mxu0 }
 0x58a   :  { %564 = vst.msk [vmem:[#allocation2 + $0x8] sm:$0xff] %vm48_vm1, %v560_v13 }
 0x58b   :  { %735 = shalt.err (!%p732_p4)
}
 0x58c   :  { %s736_s6 = scalar_lea.hbm %s897_s4, 256 }
 0x58d   :  { %p737_p5 = scmp.ne.s32.totalorder %s897_s4, %s736_s6  ;;  %p740_p6 = scmp.lt.u32.totalorder %s736_s6, %s897_s4 }
 0x58f   :  { %p742_p7 = pnand %p740_p6, %p737_p5 }
 0x591   :  { %745 = shalt.err (!%p742_p7)
}
 0x592   :  { %s751_s11 = smov 128   ;;  %s752_s12 = smov 8  }
 0x593   :  { %576 = dma.vmem_to_hbm [thread:$0]  %s571_s29, 256, %s897_s4, [#allocation3], %s751_s11, %s751_s11, %s752_s12  }
 0x594   :  { %746 = dma.done.wait [#allocation3], 256  }
 0x595   :  { %747 = vsyncadd [#allocation3], 4294967040 }
 0x596   :  { %580 = vsyncpa [#allocation3], 1 }

</bundles_post_ra>
